<compile_context>
chip_gen: v7x
topology: tpu7x:2x2x1
jax: 0.10.0
libtpu: 0.0.40
codegen_flags: <defaults>
</compile_context>

<pallas_src>
import functools

import jax
import jax.numpy as jnp
from jax.experimental import pallas as pl
from jax.experimental.pallas import tpu as pltpu


def _round_up(n, m):
    return ((n + m - 1) // m) * m


def _sublane_tile(dtype):
    # Sublane-tile rows: f32 -> 8, bf16 -> 16, int8/fp8 -> 32.
    return 32 // jnp.dtype(dtype).itemsize


def _vmem_budget_bytes():
    """Generation-aware VMEM budget: ~3/4 of physical capacity.

    -> ~48 MiB on v7x (64 MiB physical), ~96 MiB on v5e/v6e (128 MiB),
    leaving headroom for compiler-internal scratch.
    """
    phys = 128 << 20
    try:
        info = pltpu.get_tpu_info()
        phys = int(getattr(info, "vmem_capacity_bytes", phys))
    except Exception:
        pass
    return (phys * 3) // 4


def _qkv_split_kernel(x_ref, w_ref, b_ref, q_ref, k_ref, v_ref, *, kf, bb):
    """Fused q/k/v 1x1-conv tile; q/k/v split by sublane-aligned static slices.

    x_ref: [bb, C, tm], w_ref: [Ftot, C], b_ref: [Ftot, 1] (f32),
    q_ref/k_ref: [bb, Kf, tm], v_ref: [bb, Vf, tm].
    """
    w = w_ref[...]
    bias = b_ref[...]
    for j in range(bb):  # bb is a small static fold factor -> fully unrolled
        y = jnp.dot(w, x_ref[j], preferred_element_type=jnp.float32) + bias
        q_ref[j] = y[:kf].astype(q_ref.dtype)
        k_ref[j] = y[kf:2 * kf].astype(k_ref.dtype)
        v_ref[j] = y[2 * kf:].astype(v_ref.dtype)


def _qkv_fused_kernel(x_ref, w_ref, b_ref, y_ref, *, bb):
    """Fallback when Kf is not sublane-tile aligned: write one fused output."""
    w = w_ref[...]
    bias = b_ref[...]
    for j in range(bb):
        y = jnp.dot(w, x_ref[j], preferred_element_type=jnp.float32) + bias
        y_ref[j] = y.astype(y_ref.dtype)


@functools.partial(jax.jit, static_argnames=("max_tm",))
def compute_qkv_same(x, wq, bq, wk, bk, wv, bv, *, max_tm=None):
    """ComputeQKV forward for layer_type='SAME'.

    Args:
      x:  [B, C, H, W]  (NCHW, matching the PyTorch module)
      wq: [C, Kf]   bq: [Kf]    (1x1 conv weight stored as in->out matmul weight)
      wk: [C, Kf]   bk: [Kf]
      wv: [C, Vf]   bv: [Vf]
      max_tm: optional static cap on the spatial lane tile (testing / tuning).
    Returns:
      q: [B, Kf, H, W], k: [B, Kf, H, W], v: [B, Vf, H, W]   (dtype of x)
    """
    B, C, H, W = x.shape
    Kf = wq.shape[1]
    Vf = wv.shape[1]
    HW = H * W
    Ftot = 2 * Kf + Vf
    out_dtype = x.dtype

    # Fused weight (tiny, one-off) transposed to [Ftot, C] in x's dtype
    # (caller controls bf16-vs-f32 tradeoff via x's dtype); fused f32 bias.
    w_qkv = jnp.concatenate([wq, wk, wv], axis=1).T.astype(x.dtype)       # [Ftot, C]
    b_qkv = jnp.concatenate([bq, bk, bv]).astype(jnp.float32)[:, None]    # [Ftot, 1]

    # NCHW -> [B, C, HW] is a pure reshape: no transpose, no extra HBM pass.
    x3 = x.reshape(B, C, HW)

    dsize = jnp.dtype(x.dtype).itemsize
    w_dsize = jnp.dtype(w_qkv.dtype).itemsize
    out_dsize = jnp.dtype(out_dtype).itemsize
    sub = _sublane_tile(x.dtype)
    C_pad = _round_up(C, sub)
    Ftot_pad = _round_up(Ftot, sub)

    # ---- VMEM budgeting (generation aware) --------------------------------
    budget = _vmem_budget_bytes()

    # Resident (constant-block-index) weight + bias footprint, layout-padded.
    w_buf_bytes = Ftot_pad * _round_up(C, 128) * w_dsize
    b_buf_bytes = _round_up(Ftot, 8) * 128 * 4
    # Single-buffer big resident weights (their block index never changes);
    # halves their footprint on v7x's tight 64 MiB VMEM.
    single_buffer_w = 2 * (w_buf_bytes + b_buf_bytes) > (8 << 20)
    n_w_buf = 1 if single_buffer_w else 2
    weight_bytes = n_w_buf * (w_buf_bytes + b_buf_bytes)

    headroom = 4 << 20
    avail = max(budget - weight_bytes - headroom, 2 << 20)

    # Bytes per output lane column for one image's double-buffered tiles
    # (x tile + q/k/v tiles).
    per_lane = 2 * (C_pad + Ftot_pad) * max(dsize, out_dsize)

    # ---- Spatial (lane) tile derived from the VMEM budget ------------------
    tm_cap = max(128, (avail // per_lane) // 128 * 128)
    if max_tm is not None:
        tm_cap = min(tm_cap, max(128, (max_tm // 128) * 128))

    if HW <= tm_cap:
        tm = HW
        # Fold several batch images per grid step when HW is small, to
        # amortize the ~0.35 us fixed per-step overhead and enlarge DMAs.
        hw_lanes = _round_up(HW, 128)
        bb_vmem = max(1, int(avail // (per_lane * hw_lanes)))
        bb = min(B, bb_vmem, max(1, 2048 // hw_lanes))
        if B >= 2:
            # Keep at least 2 grid steps so v7x megacore has work for both TCs.
            bb = min(bb, max(1, B // 2))
        bb = max(bb, 1)
        # Avoid ragged batch blocks.
        while B % bb:
            bb -= 1
    else:
        tm = tm_cap
        bb = 1

    n_spatial = pl.cdiv(HW, tm)
    n_batch = pl.cdiv(B, bb)

    # Put the larger parallel axis first so megacore sharding (v7x) sees an
    # axis of extent >= 2 whenever one exists.
    spatial_major = n_spatial >= n_batch
    if spatial_major:
        grid = (n_spatial, n_batch)
        def data_map(i, b):
            return (b, 0, i)
    else:
        grid = (n_batch, n_spatial)
        def data_map(b, i):
            return (b, 0, i)

    def const_map(*_):
        return (0, 0)

    if single_buffer_w:
        w_spec = pl.BlockSpec((Ftot, C), const_map, pipeline_mode=pl.Buffered(1))
        b_spec = pl.BlockSpec((Ftot, 1), const_map, pipeline_mode=pl.Buffered(1))
    else:
        w_spec = pl.BlockSpec((Ftot, C), const_map)
        b_spec = pl.BlockSpec((Ftot, 1), const_map)

    tm_lanes = _round_up(tm, 128)
    tile_bytes = 2 * bb * (C_pad * dsize + Ftot_pad * out_dsize) * tm_lanes
    vmem_limit = int(min(max(weight_bytes + tile_bytes + headroom, 16 << 20), budget))

    # CostEstimate with per-array dtypes (advisory only).
    cost = pl.CostEstimate(
        flops=2 * B * HW * C * Ftot,
        transcendentals=0,
        bytes_accessed=(B * C * HW * dsize
                        + Ftot * C * w_dsize
                        + Ftot * 4
                        + B * Ftot * HW * out_dsize),
    )

    compiler_params = pltpu.CompilerParams(
        dimension_semantics=("parallel", "parallel"),
        vmem_limit_bytes=vmem_limit,
    )

    # The in-kernel q/k/v split needs Kf to start q/k/v rows on sublane-tile
    # boundaries (8 rows f32, 16 bf16, 32 int8); otherwise fall back to one
    # fused output and split in the wrapper (correct, just one extra pass).
    sub_out = _sublane_tile(out_dtype)
    split_aligned = (Kf % sub_out == 0)

    if split_aligned:
        kernel = functools.partial(_qkv_split_kernel, kf=Kf, bb=bb)
        q3, k3, v3 = pl.pallas_call(
            kernel,
            out_shape=(
                jax.ShapeDtypeStruct((B, Kf, HW), out_dtype),
                jax.ShapeDtypeStruct((B, Kf, HW), out_dtype),
                jax.ShapeDtypeStruct((B, Vf, HW), out_dtype),
            ),
            grid_spec=pltpu.PrefetchScalarGridSpec(
                num_scalar_prefetch=0,
                grid=grid,
                in_specs=[
                    pl.BlockSpec((bb, C, tm), data_map),   # x tile
                    w_spec,                                # W_qkv (resident)
                    b_spec,                                # b_qkv (resident)
                ],
                out_specs=[
                    pl.BlockSpec((bb, Kf, tm), data_map),
                    pl.BlockSpec((bb, Kf, tm), data_map),
                    pl.BlockSpec((bb, Vf, tm), data_map),
                ],
            ),
            compiler_params=compiler_params,
            cost_estimate=cost,
        )(x3, w_qkv, b_qkv)
    else:
        kernel = functools.partial(_qkv_fused_kernel, bb=bb)
        y3 = pl.pallas_call(
            kernel,
            out_shape=jax.ShapeDtypeStruct((B, Ftot, HW), out_dtype),
            grid_spec=pltpu.PrefetchScalarGridSpec(
                num_scalar_prefetch=0,
                grid=grid,
                in_specs=[
                    pl.BlockSpec((bb, C, tm), data_map),
                    w_spec,
                    b_spec,
                ],
                out_specs=pl.BlockSpec((bb, Ftot, tm), data_map),
            ),
            compiler_params=compiler_params,
            cost_estimate=cost,
        )(x3, w_qkv, b_qkv)
        q3 = y3[:, :Kf]
        k3 = y3[:, Kf:2 * Kf]
        v3 = y3[:, 2 * Kf:]

    # [B, F, HW] -> [B, F, H, W] is a free reshape (no transpose).
    q = q3.reshape(B, Kf, H, W)
    k = k3.reshape(B, Kf, H, W)
    v = v3.reshape(B, Vf, H, W)
    return q, k, v


def _reference_qkv(x, wq, bq, wk, bk, wv, bv):
    """Plain-JAX reference: 1x1 convs over NCHW == einsum over channel axis."""
    def conv1x1(x, w, b):
        y = jnp.einsum("bchw,cf->bfhw", x.astype(jnp.float32),
                       w.astype(jnp.float32))
        return y + b.astype(jnp.float32)[None, :, None, None]
    return conv1x1(x, wq, bq), conv1x1(x, wk, bk), conv1x1(x, wv, bv)


def _run_case(key, B, C, H, W, Kf, Vf, dtype, atol, max_tm=None):
    kx, kq, kk, kv, kbq, kbk, kbv = jax.random.split(key, 7)
    x = jax.random.normal(kx, (B, C, H, W), jnp.float32).astype(dtype)
    wq = (jax.random.normal(kq, (C, Kf), jnp.float32) * 0.1).astype(dtype)
    wk = (jax.random.normal(kk, (C, Kf), jnp.float32) * 0.1).astype(dtype)
    wv = (jax.random.normal(kv, (C, Vf), jnp.float32) * 0.1).astype(dtype)
    bq = (jax.random.normal(kbq, (Kf,), jnp.float32) * 0.1).astype(dtype)
    bk = (jax.random.normal(kbk, (Kf,), jnp.float32) * 0.1).astype(dtype)
    bv = (jax.random.normal(kbv, (Vf,), jnp.float32) * 0.1).astype(dtype)

    q, k, v = compute_qkv_same(x, wq, bq, wk, bk, wv, bv, max_tm=max_tm)
    jax.block_until_ready((q, k, v))

    q_ref, k_ref, v_ref = _reference_qkv(x, wq, bq, wk, bk, wv, bv)
    assert q.shape == (B, Kf, H, W) and k.shape == (B, Kf, H, W)
    assert v.shape == (B, Vf, H, W)
    assert jnp.allclose(q.astype(jnp.float32), q_ref, atol=atol)
    assert jnp.allclose(k.astype(jnp.float32), k_ref, atol=atol)
    assert jnp.allclose(v.astype(jnp.float32), v_ref, atol=atol)


if __name__ == "__main__":
    root = jax.random.PRNGKey(0)
    k1, k2, k3 = jax.random.split(root, 3)

    # 1) Shapes matching the module's small forward (aligned split path).
    _run_case(k1, B=2, C=4, H=16, W=16, Kf=8, Vf=8,
              dtype=jnp.float32, atol=1e-5)

    # 2) Ragged spatial tail (HW=400, forced tm=128), Kf != Vf, batch of 3.
    _run_case(k2, B=3, C=16, H=20, W=20, Kf=16, Vf=8,
              dtype=jnp.float32, atol=1e-5, max_tm=128)

    # 3) bf16 inputs with a sublane-misaligned Kf -> fused-output fallback.
    _run_case(k3, B=2, C=8, H=8, W=8, Kf=12, Vf=8,
              dtype=jnp.bfloat16, atol=2e-2)

    print("KERNEL_OK")
</pallas_src>

<mosaic_0001>
module attributes {stable_mosaic.version = 11 : i64} {
  func.func @_qkv_split_kernel(%arg0: i32, %arg1: i32, %arg2: memref<1x4x256xf32, #tpu.memory_space<vmem>>, %arg3: memref<24x4xf32, #tpu.memory_space<vmem>>, %arg4: memref<24x1xf32, #tpu.memory_space<vmem>>, %arg5: memref<1x8x256xf32, #tpu.memory_space<vmem>>, %arg6: memref<1x8x256xf32, #tpu.memory_space<vmem>>, %arg7: memref<1x8x256xf32, #tpu.memory_space<vmem>>) attributes {dimension_semantics = [#tpu.dimension_semantics<parallel>, #tpu.dimension_semantics<parallel>], iteration_bounds = array<i64: 2, 1>, scalar_prefetch = 0 : i64, scratch_operands = 0 : i64, tpu.core_type = #tpu.core_type<tc>, window_params = [{transform_indices = @transform_0, window_bounds = array<i64: 1, 4, 256>}, {pipeline_mode = #tpu.pipeline_mode<synchronous>, transform_indices = @transform_1, window_bounds = array<i64: 24, 4>}, {pipeline_mode = #tpu.pipeline_mode<synchronous>, transform_indices = @transform_2, window_bounds = array<i64: 24, 1>}, {transform_indices = @transform_3, window_bounds = array<i64: 1, 8, 256>}, {transform_indices = @transform_4, window_bounds = array<i64: 1, 8, 256>}, {transform_indices = @transform_5, window_bounds = array<i64: 1, 8, 256>}]} {
    %c0 = arith.constant 0 : index
    %c0_0 = arith.constant 0 : index
    %0 = vector.load %arg3[%c0, %c0_0] : memref<24x4xf32, #tpu.memory_space<vmem>>, vector<24x4xf32>
    %c0_1 = arith.constant 0 : index
    %c0_2 = arith.constant 0 : index
    %1 = vector.load %arg4[%c0_1, %c0_2] : memref<24x1xf32, #tpu.memory_space<vmem>>, vector<24x1xf32>
    %c0_3 = arith.constant 0 : index
    %c0_4 = arith.constant 0 : index
    %c0_5 = arith.constant 0 : index
    %2 = vector.load %arg2[%c0_3, %c0_4, %c0_5] : memref<1x4x256xf32, #tpu.memory_space<vmem>>, vector<1x4x256xf32>
    %3 = vector.shape_cast %2 : vector<1x4x256xf32> to vector<4x256xf32>
    %cst = arith.constant dense<0.000000e+00> : vector<24x256xf32>
    %4 = tpu.matmul %0, %3, %cst {dimension_numbers = #tpu.dot_dimension_numbers<[1], [0], [0], [1], [0, 0, 1, 1], [], []>} : vector<24x4xf32>, vector<4x256xf32>, vector<24x256xf32> -> vector<24x256xf32>
    %5 = vector.broadcast %1 : vector<24x1xf32> to vector<24x256xf32>
    %6 = arith.addf %4, %5 : vector<24x256xf32>
    %7 = vector.extract_strided_slice %6 {offsets = [0, 0], sizes = [8, 256], strides = [1, 1]} : vector<24x256xf32> to vector<8x256xf32>
    %c0_6 = arith.constant 0 : index
    %c0_7 = arith.constant 0 : index
    %c0_8 = arith.constant 0 : index
    %8 = vector.load %arg5[%c0_6, %c0_7, %c0_8] : memref<1x8x256xf32, #tpu.memory_space<vmem>>, vector<1x8x256xf32>
    %9 = vector.shape_cast %8 : vector<1x8x256xf32> to vector<8x256xf32>
    %10 = vector.shape_cast %7 : vector<8x256xf32> to vector<1x8x256xf32>
    tpu.vector_store %arg5[%c0_6, %c0_7, %c0_8], %10 {strides = array<i32>} : memref<1x8x256xf32, #tpu.memory_space<vmem>>, vector<1x8x256xf32>,
    %11 = vector.extract_strided_slice %6 {offsets = [8, 0], sizes = [8, 256], strides = [1, 1]} : vector<24x256xf32> to vector<8x256xf32>
    %c0_9 = arith.constant 0 : index
    %c0_10 = arith.constant 0 : index
    %c0_11 = arith.constant 0 : index
    %12 = vector.load %arg6[%c0_9, %c0_10, %c0_11] : memref<1x8x256xf32, #tpu.memory_space<vmem>>, vector<1x8x256xf32>
    %13 = vector.shape_cast %12 : vector<1x8x256xf32> to vector<8x256xf32>
    %14 = vector.shape_cast %11 : vector<8x256xf32> to vector<1x8x256xf32>
    tpu.vector_store %arg6[%c0_9, %c0_10, %c0_11], %14 {strides = array<i32>} : memref<1x8x256xf32, #tpu.memory_space<vmem>>, vector<1x8x256xf32>,
    %15 = vector.extract_strided_slice %6 {offsets = [16, 0], sizes = [8, 256], strides = [1, 1]} : vector<24x256xf32> to vector<8x256xf32>
    %c0_12 = arith.constant 0 : index
    %c0_13 = arith.constant 0 : index
    %c0_14 = arith.constant 0 : index
    %16 = vector.load %arg7[%c0_12, %c0_13, %c0_14] : memref<1x8x256xf32, #tpu.memory_space<vmem>>, vector<1x8x256xf32>
    %17 = vector.shape_cast %16 : vector<1x8x256xf32> to vector<8x256xf32>
    %18 = vector.shape_cast %15 : vector<8x256xf32> to vector<1x8x256xf32>
    tpu.vector_store %arg7[%c0_12, %c0_13, %c0_14], %18 {strides = array<i32>} : memref<1x8x256xf32, #tpu.memory_space<vmem>>, vector<1x8x256xf32>,
    return
  }
  func.func @transform_0(%arg0: i32, %arg1: i32) -> (i32, i32, i32) {
    %c0_i32 = arith.constant 0 : i32
    %c0_i32_0 = arith.constant 0 : i32
    return %arg0, %c0_i32, %arg1 : i32, i32, i32
  }
  func.func @transform_1(%arg0: i32, %arg1: i32) -> (i32, i32) {
    %c0_i32 = arith.constant 0 : i32
    %c0_i32_0 = arith.constant 0 : i32
    %c0_i32_1 = arith.constant 0 : i32
    return %c0_i32, %c0_i32_0 : i32, i32
  }
  func.func @transform_2(%arg0: i32, %arg1: i32) -> (i32, i32) {
    %c0_i32 = arith.constant 0 : i32
    %c0_i32_0 = arith.constant 0 : i32
    %c0_i32_1 = arith.constant 0 : i32
    return %c0_i32, %c0_i32_0 : i32, i32
  }
  func.func @transform_3(%arg0: i32, %arg1: i32) -> (i32, i32, i32) {
    %c0_i32 = arith.constant 0 : i32
    %c0_i32_0 = arith.constant 0 : i32
    return %arg0, %c0_i32, %arg1 : i32, i32, i32
  }
  func.func @transform_4(%arg0: i32, %arg1: i32) -> (i32, i32, i32) {
    %c0_i32 = arith.constant 0 : i32
    %c0_i32_0 = arith.constant 0 : i32
    return %arg0, %c0_i32, %arg1 : i32, i32, i32
  }
  func.func @transform_5(%arg0: i32, %arg1: i32) -> (i32, i32, i32) {
    %c0_i32 = arith.constant 0 : i32
    %c0_i32_0 = arith.constant 0 : i32
    return %arg0, %c0_i32, %arg1 : i32, i32, i32
  }
}

</mosaic_0001>

<bundles_post_ra>
// kernel: compute_qkv_same.1
= control target key start
LH: loop header
LB: loop body
LE: loop exit
PB: predicated region body
PF: predicated region fallthrough
CT: control target
= control target key end

     0   :  { %s737_s18 = smov 0   ;;  %s739_s19 = smov 0   ;;  %s794_s0 = inlined_call_operand.vmem [shape: f32[2,4,256], index: 0, kind: input, shape index: {}]   ;;  %s795_s1 = inlined_call_operand.vmem [shape: f32[24,4], index: 1, kind: input, shape index: {}]   ;;  %s796_s2 = inlined_call_operand.vmem [shape: f32[24,1], index: 2, kind: input, shape index: {}]   ;;  %s797_s3 = inlined_call_operand.vmem [shape: f32[2,8,256], index: 3, kind: output, shape index: {0}]   ;;  %s798_s4 = inlined_call_operand.vmem [shape: f32[2,8,256], index: 4, kind: output, shape index: {1}]   ;;  %s799_s5 = inlined_call_operand.vmem [shape: f32[2,8,256], index: 5, kind: output, shape index: {2}]  }
   0x1   :  { %s741_s20 = smov 0  }
   0x2 LB: > { %s28_s21 = sadd.s32 1, %s699_s19  ;;  %p630_p0 = scmp.ge.s32.totalorder %s703_s20, 1  ;;  %s703_s20 = sphi %s741_s20, %s16_s20   ;;  %s699_s19 = sphi %s739_s19, %s801_s19   ;;  %s695_s18 = sphi %s737_s18, %s800_s18  }
   0x3   : > { %p30_p1 = scmp.ge.s32.totalorder %s28_s21, 2  ;;  %p217_p2 = scmp.lt.s32.totalorder %s703_s20, 3 }
   0x5   : > { %s803_s21 = smov (%p30_p1, %s28_s21), 0  ;;  %p218_p3 = pnand %p630_p0, %p217_p2 }
   0x6   : > { %p272_p4 = scmp.lt.s32.totalorder (!%p218_p3), %s695_s18, 1  ;;  %v705_v0 = vmov (!%p218_p3), 0.0   ;;  %v314_v1 = vld [vmem:[%s796_s2] sm:$0xff] (!%p218_p3)  ;;  %v706_v2 = vmov (!%p218_p3), 0   ;;  %v316_v3 = vld [vmem:[%s796_s2 + $0x10] sm:$0xff] (!%p218_p3)  ;;  %v315_v4 = vld [vmem:[%s796_s2 + $0x8] sm:$0xff] (!%p218_p3) }
   0x7   : > { %221 = sbr.rel (%p218_p3) target bundleno = 242 (0xf2), region = 32  ;;  %414 = vmatprep.mubr.f32.mxu0 (!%p218_p3), %v705_v0  ;;  %420 = vmatprep.mubr.f32.mxu1 (!%p218_p3), %v705_v0  ;;  %vm345_vm0 = vcmask (!%p218_p3), 1043456   ;;  %v311_v7 = vld [vmem:[%s795_s1] sm:$0xff] (!%p218_p3)  ;;  %vm335_vm1 = vcmask (!%p218_p3), 31744   ;;  %v312_v8 = vld [vmem:[%s795_s1 + $0x8] sm:$0xff] (!%p218_p3)  ;;  %v313_v9 = vld [vmem:[%s795_s1 + $0x10] sm:$0xff] (!%p218_p3) }
   0x8   : > { %678 = vset.pattern.permute.xlu0 (!%p218_p3), %v706_v2  ;;  %679 = vset.pattern.permute.xlu1 (!%p218_p3), %v706_v2 }
   0x9   : > { %320 = vperm.xlu0 (!%p218_p3), %678, %v314_v1   ;;  %330 = vperm.xlu1 (!%p218_p3), %679, %v316_v3  }
   0xd   : > { %325 = vperm.xlu0 (!%p218_p3), %678, %v315_v4  }
   0xe   : > { %s805_s18 = smov (!%p272_p4, %s695_s18), 1 }
   0xf   : > { %s646_s26 = sshll.u32 %s805_s18, 3  ;;  %s647_s13 = sshll.u32 %s805_s18, 4 }
  0x10   : > { %s279_s6 = scalar_lea.vmem %s794_s0, %s646_s26  ;;  %s289_s16 = scalar_lea.vmem %s797_s3, %s647_s13 }
  0x11   : > { %v317_v5 = vld [vmem:[%s279_s6] sm:$0xff]  ;;  %s299_s23 = scalar_lea.vmem %s798_s4, %s647_s13  ;;  %s309_s25 = scalar_lea.vmem %s799_s5, %s647_s13 }
  0x12   : > { %v334_v6 = vcombine.high %v317_v5, %v317_v5 }
  0x14   : > { %639 = vmatprep.subr.msk.mxu0 %vm345_vm0, %v334_v6  ;;  %650 = vmatprep.subr.msk.mxu1 %vm345_vm0, %v334_v6 }
  0x15   : > { %640 = vmatpush1.msk.msra.mxu0 %vm345_vm0, %v317_v5  ;;  %651 = vmatpush1.msk.msra.mxu1 %vm345_vm0, %v317_v5 }
  0x16   : > { %641 = vmatmul.mubr.msk.f32.vlgmr.msra.gmra.mrb[0].mxu0 %vm335_vm1, %v311_v7  ;;  %642 = vmatmul.mubr.msk.f32.vlgmr.msra.gmra.mrb[0].mxu1 %vm335_vm1, %v312_v8 }
  0x17   : > { %426 = vmatprep.mubr.f32.mxu1 %v705_v0 }
  0x1a   : > { %643 = vmatmul.mubr.msk.f32.gmra.mrb[2].mxu1 %vm335_vm1, %v313_v9 }
  0x88   : > { %v321_v10 = vpop.permute.xlu0 %320  ;;  %v331_v20 = vpop.permute.xlu1 %330 }
  0x8c   : > { %v326_v11 = vpop.permute.xlu0 %325 }
  0xe9   : > { %v416_v12 = vpop.f32.mrb[0].mxu0  ;;  %v422_v13 = vpop.f32.mrb[0].mxu1 }
  0xea   : > { %v417_v14 = vadd.f32 %v416_v12, %v321_v10  ;;  %v423_v15 = vadd.f32 %v422_v13, %v326_v11  ;;  %v418_v16 = vpop.f32.mrb[1].mxu0  ;;  %v424_v17 = vpop.f32.mrb[1].mxu1 }
  0xeb   : > { %v419_v18 = vadd.f32 %v418_v16, %v321_v10  ;;  %v425_v19 = vadd.f32 %v424_v17, %v326_v11 }
  0xec   : > { %433 = vst [vmem:[%s289_s16] sm:$0xff] %v417_v14  ;;  %435 = vst [vmem:[%s299_s23] sm:$0xff] %v423_v15 }
  0xed   : > { %434 = vst [vmem:[%s289_s16 + $0x8] sm:$0xff] %v419_v18  ;;  %436 = vst [vmem:[%s299_s23 + $0x8] sm:$0xff] %v425_v19  ;;  %v428_v21 = vpop.f32.mrb[2].mxu1 }
  0xee   : > { %v429_v22 = vadd.f32 %v428_v21, %v331_v20  ;;  %v430_v23 = vpop.f32.mrb[3].mxu1 }
  0xef   : > { %v431_v24 = vadd.f32 %v430_v23, %v331_v20 }
  0xf0   : > { %437 = vst [vmem:[%s309_s25] sm:$0xff] %v429_v22 }
  0xf1   : > { %438 = vst [vmem:[%s309_s25 + $0x8] sm:$0xff] %v431_v24 }
  0xf2 PF: > { %s16_s20 = sadd.s32 1, %s703_s20   ;;  %s800_s18 = smov %s699_s19 }
  0xf3   : > { %p13_p5 = scmp.ge.s32.totalorder %s16_s20, 4   ;;  %s801_s19 = smov %s803_s21 }
  0xf5   :  { %15 = sbr.rel (!%p13_p5) target bundleno = 2 (0x2), region = 86 }

</bundles_post_ra>
